<compile_context>
chip_gen: v7x
topology: tpu7x:2x2x1
jax: 0.10.0
libtpu: 0.0.40
codegen_flags: <defaults>
</compile_context>

<pallas_src>
import jax
import jax.numpy as jnp
from jax.experimental import pallas as pl
from jax.experimental.pallas import tpu as pltpu

LANE = 128
SUBLANE = 8


def _round_up(x, m):
    return ((x + m - 1) // m) * m


def _silu(x):
    # f32 silu; sigmoid via EUP exp + approx reciprocal (no precise divide).
    return x * pl.reciprocal(1.0 + jnp.exp(-x), approx=True)


# -----------------------------------------------------------------------------
# Kernel
# -----------------------------------------------------------------------------
def scorenet_kernel(
    # per-batch-tile inputs
    xy_ref, t_ref, tau_ref,
    # parameters (resident, constant index_map)
    embf_ref,                 # (k, HP)   f32   folded emb @ W1b
    tw1_ref, tb1_ref,         # (1, HP)   f32   time-MLP layer 1
    w1a_ref,                  # (d_xy_pad, HP)  bf16  xy part of W1
    wtf_ref,                  # (HP, HP)  bf16  folded tw2 @ W1c
    b1_ref,                   # (1, HP)   f32   folded b1 + tb2 @ W1c
    w2_ref, b2_ref,           # (HP, HP) bf16 / (1, HP) f32
    wh_ref, bh_ref,           # fused heads [score | class], lane padded
    # output: fused, lane-dense (TB, DOUT_P) slab
    out_ref,
):
    xy = xy_ref[...]          # (TB, d_xy_pad)  f32
    t = t_ref[...]            # (TB, 1)         int32
    tau = tau_ref[...]        # (TB, 1)         f32

    k, HP = embf_ref.shape
    TB = xy.shape[0]

    # --- folded embedding lookup (already multiplied by W1's t_emb block).
    # k is tiny -> VPU select/accumulate; for large k use a one-hot @ table
    # MXU pass instead.
    # TODO(synk): out-of-range t_corrupt yields a zero contribution here,
    # whereas torch nn.Embedding would raise; callers must pass t in [0, k).
    t_contrib = jnp.zeros((TB, HP), jnp.float32)
    for i in range(k):
        row = embf_ref[pl.ds(i, 1), :]                         # (1, HP)
        t_contrib = t_contrib + (t == i).astype(jnp.float32) * row

    # --- time-MLP layer 1: Linear(1, H) is a K=1 contraction -> VPU broadcast.
    ht = _silu(tau * tw1_ref[...] + tb1_ref[...])              # (TB, HP) f32

    # --- trunk layer 1 with the time-MLP 2nd layer folded through W1:
    #   h = silu(xy@W1a + ht@(tw2@W1c) + (emb@W1b)[t] + (b1 + tb2@W1c))
    h = (jnp.dot(xy.astype(jnp.bfloat16), w1a_ref[...],
                 preferred_element_type=jnp.float32)
         + jnp.dot(ht.astype(jnp.bfloat16), wtf_ref[...],
                   preferred_element_type=jnp.float32)
         + t_contrib + b1_ref[...])
    h = _silu(h)

    # --- trunk layer 2 ---
    h = _silu(jnp.dot(h.astype(jnp.bfloat16), w2_ref[...],
                      preferred_element_type=jnp.float32) + b2_ref[...])

    # --- fused heads: one lane-dense matmul, one unmasked store ---
    out_ref[...] = (jnp.dot(h.astype(jnp.bfloat16), wh_ref[...],
                            preferred_element_type=jnp.float32) + bh_ref[...])


# -----------------------------------------------------------------------------
# Parameter init (logical sizes, f32)
# -----------------------------------------------------------------------------
def init_params(key, d_x, d_y, k, hidden):
    d_xy = d_x + d_y
    d_in = d_xy + 2 * hidden
    keys = jax.random.split(key, 7)

    def lin(kk, din, dout):
        w = jax.random.normal(kk, (din, dout), jnp.float32) * 0.1
        b = jax.random.normal(jax.random.fold_in(kk, 1), (1, dout), jnp.float32) * 0.1
        return w, b

    emb = jax.random.normal(keys[0], (k, hidden), jnp.float32) * 0.1
    tw1, tb1 = lin(keys[1], 1, hidden)
    tw2, tb2 = lin(keys[2], hidden, hidden)
    w1, b1 = lin(keys[3], d_in, hidden)
    w2, b2 = lin(keys[4], hidden, hidden)
    ws, bs = lin(keys[5], hidden, d_xy)
    wc, bc = lin(keys[6], hidden, k + 1)
    return dict(emb=emb, tw1=tw1, tb1=tb1, tw2=tw2, tb2=tb2,
                w1=w1, b1=b1, w2=w2, b2=b2, ws=ws, bs=bs, wc=wc, bc=bc)


# -----------------------------------------------------------------------------
# Offline fold + zero-padding to lane-dense kernel layout
# -----------------------------------------------------------------------------
def pad_params(p, d_x, d_y, k, hidden):
    """Fold linear maps through W1 (in f32), then pad to lane-dense layout.

      emb_fold = emb @ W1b           (k, H)    consumed by VPU lookup
      w_tf     = tw2 @ W1c           (H, H)    MXU weight, bf16
      b1'      = b1 + tb2 @ W1c      (1, H)
      heads fused: columns [0:d_xy] = score head, [d_xy:d_xy+k+1] = class head

    Zero padding keeps the math identical: padded hidden channels remain
    exactly zero through every layer (silu(0) == 0) and padded output
    columns are sliced off in the wrapper.
    """
    d_xy = d_x + d_y
    d_xy_pad = _round_up(d_xy, SUBLANE)
    H = hidden
    HP = _round_up(H, LANE)
    DOUT = d_xy + (k + 1)
    DOUTP = _round_up(DOUT, LANE)

    # split trunk-layer-1 weight along the concat axis [xy | t_emb | time_emb]
    w1 = p["w1"]
    w1a = w1[:d_xy]                     # (d_xy, H)
    w1b = w1[d_xy:d_xy + H]             # (H, H)   multiplies t_emb
    w1c = w1[d_xy + H:]                 # (H, H)   multiplies time_emb

    # algebraic folds, done in f32 before any bf16 cast
    emb_fold = p["emb"] @ w1b                       # (k, H)
    w_tf = p["tw2"] @ w1c                           # (H, H)
    b1_fold = p["b1"] + p["tb2"] @ w1c              # (1, H)

    def pad2(a, r, c, dtype=jnp.float32):
        out = jnp.zeros((r, c), dtype)
        return out.at[:a.shape[0], :a.shape[1]].set(a.astype(dtype))

    # fused heads: columns [0:d_xy] = score head, [d_xy:DOUT] = class head
    wh = jnp.zeros((HP, DOUTP), jnp.float32)
    wh = wh.at[:H, :d_xy].set(p["ws"])
    wh = wh.at[:H, d_xy:DOUT].set(p["wc"])
    bh = jnp.zeros((1, DOUTP), jnp.float32)
    bh = bh.at[:, :d_xy].set(p["bs"])
    bh = bh.at[:, d_xy:DOUT].set(p["bc"])

    padded = dict(
        embf=pad2(emb_fold, k, HP),                         # f32 (VPU-only)
        tw1=pad2(p["tw1"], 1, HP),
        tb1=pad2(p["tb1"], 1, HP),
        w1a=pad2(w1a, d_xy_pad, HP, jnp.bfloat16),          # MXU weights in bf16
        wtf=pad2(w_tf, HP, HP, jnp.bfloat16),
        b1=pad2(b1_fold, 1, HP),
        w2=pad2(p["w2"], HP, HP, jnp.bfloat16),
        b2=pad2(p["b2"], 1, HP),
        wh=wh.astype(jnp.bfloat16),
        bh=bh,
    )
    return padded, HP, DOUTP, d_xy_pad


# -----------------------------------------------------------------------------
# Wrapper
# -----------------------------------------------------------------------------
def _choose_batch_tile(B):
    """Batch tile: multiple of 8 sublanes, <=1024, balanced across tiles,
    and >=2 tiles whenever B allows so the "parallel" axis actually shards
    across v7x's two TensorCores."""
    TARGET = 1024
    n_tiles = max(1, -(-B // TARGET))
    if n_tiles < 2 and B >= 16:
        n_tiles = 2
    return _round_up(-(-B // n_tiles), SUBLANE)


def scorenet_forward(padded, xy, t_corrupt, tau, d_xy, k, d_xy_pad):
    B = xy.shape[0]
    DOUTP = padded["wh"].shape[1]

    TB = _choose_batch_tile(B)
    Bp = _round_up(B, TB)

    # pad batch to a tile multiple and xy columns to a sublane multiple
    t2d = t_corrupt.reshape(B, 1).astype(jnp.int32)
    xy_p = jnp.zeros((Bp, d_xy_pad), jnp.float32).at[:B, :d_xy].set(xy)
    t_p = jnp.zeros((Bp, 1), jnp.int32).at[:B].set(t2d)
    tau_p = jnp.zeros((Bp, 1), jnp.float32).at[:B].set(tau)

    grid = (Bp // TB,)

    def batch_spec(width):
        return pl.BlockSpec((TB, width), lambda i: (i, 0))

    def const_spec(arr):
        # Grid-invariant resident weights.  (If hidden scales to HP >= 1024
        # on v7x, switch these to pipeline_mode=pl.Buffered(1) so they are
        # not double-buffered; at HP=128 it is noise.)
        return pl.BlockSpec(arr.shape, lambda i: (0, 0))

    weight_order = ("embf", "tw1", "tb1", "w1a", "wtf", "b1",
                    "w2", "b2", "wh", "bh")
    weights = [padded[n] for n in weight_order]

    in_specs = ([batch_spec(d_xy_pad), batch_spec(1), batch_spec(1)]
                + [const_spec(w) for w in weights])
    out_spec = pl.BlockSpec((TB, DOUTP), lambda i: (i, 0))

    out = pl.pallas_call(
        scorenet_kernel,
        out_shape=jax.ShapeDtypeStruct((Bp, DOUTP), jnp.float32),
        grid=grid,
        in_specs=in_specs,
        out_specs=out_spec,
        compiler_params=pltpu.CompilerParams(
            dimension_semantics=("parallel",)),   # megacore-shard the batch axis
    )(xy_p, t_p, tau_p, *weights)

    # `out` stays one 128-lane slab (DOUTP == 128 here); consumers that can
    # work on the padded slab should slice lazily at use sites instead.
    score = out[:B, :d_xy]
    logits = out[:B, d_xy:d_xy + (k + 1)]
    return score, logits


# -----------------------------------------------------------------------------
# Pure-JAX reference (mirrors the PyTorch forward, logical/unfolded f32 params)
# -----------------------------------------------------------------------------
def scorenet_reference(params, xy, t_corrupt, tau):
    t_emb = params["emb"][t_corrupt]                                  # (B, H)
    ht = jax.nn.silu(tau @ params["tw1"] + params["tb1"])
    time_emb = ht @ params["tw2"] + params["tb2"]
    h = jnp.concatenate([xy, t_emb, time_emb], axis=-1)
    h = jax.nn.silu(h @ params["w1"] + params["b1"])
    h = jax.nn.silu(h @ params["w2"] + params["b2"])
    score = h @ params["ws"] + params["bs"]
    logits = h @ params["wc"] + params["bc"]
    return score, logits


if __name__ == "__main__":
    B, d_x, d_y, k, hidden = 8, 4, 2, 3, 32

    key = jax.random.PRNGKey(0)
    kp, kx, kt, ktau = jax.random.split(key, 4)

    params = init_params(kp, d_x, d_y, k, hidden)
    padded, HP, DOUTP, d_xy_pad = pad_params(params, d_x, d_y, k, hidden)

    xy = jax.random.normal(kx, (B, d_x + d_y), jnp.float32)
    t_corrupt = jax.random.randint(kt, (B,), 0, k, jnp.int32)
    tau = jax.random.uniform(ktau, (B, 1), jnp.float32)

    score, logits = scorenet_forward(padded, xy, t_corrupt, tau,
                                     d_x + d_y, k, d_xy_pad)
    jax.block_until_ready((score, logits))

    ref_score, ref_logits = scorenet_reference(params, xy, t_corrupt, tau)
    assert score.shape == (B, d_x + d_y) and logits.shape == (B, k + 1)
    # bf16 MXU weights + approx-reciprocal sigmoid -> relaxed tolerance vs f32 ref
    assert jnp.allclose(score, ref_score, atol=3e-2, rtol=3e-2), (
        "score max abs err", float(jnp.max(jnp.abs(score - ref_score))))
    assert jnp.allclose(logits, ref_logits, atol=3e-2, rtol=3e-2), (
        "logits max abs err", float(jnp.max(jnp.abs(logits - ref_logits))))

    print("KERNEL_OK")
</pallas_src>

<mosaic_0001>
module attributes {stable_mosaic.version = 11 : i64} {
  func.func @scorenet_kernel(%arg0: i32, %arg1: memref<8x8xf32, #tpu.memory_space<vmem>>, %arg2: memref<8x1xi32, #tpu.memory_space<vmem>>, %arg3: memref<8x1xf32, #tpu.memory_space<vmem>>, %arg4: memref<3x128xf32, #tpu.memory_space<vmem>>, %arg5: memref<1x128xf32, #tpu.memory_space<vmem>>, %arg6: memref<1x128xf32, #tpu.memory_space<vmem>>, %arg7: memref<8x128xbf16, #tpu.memory_space<vmem>>, %arg8: memref<128x128xbf16, #tpu.memory_space<vmem>>, %arg9: memref<1x128xf32, #tpu.memory_space<vmem>>, %arg10: memref<128x128xbf16, #tpu.memory_space<vmem>>, %arg11: memref<1x128xf32, #tpu.memory_space<vmem>>, %arg12: memref<128x128xbf16, #tpu.memory_space<vmem>>, %arg13: memref<1x128xf32, #tpu.memory_space<vmem>>, %arg14: memref<8x128xf32, #tpu.memory_space<vmem>>) attributes {dimension_semantics = [#tpu.dimension_semantics<parallel>], iteration_bounds = array<i64: 1>, scalar_prefetch = 0 : i64, scratch_operands = 0 : i64, tpu.core_type = #tpu.core_type<tc>, window_params = [{transform_indices = @transform_0, window_bounds = array<i64: 8, 8>}, {transform_indices = @transform_1, window_bounds = array<i64: 8, 1>}, {transform_indices = @transform_2, window_bounds = array<i64: 8, 1>}, {pipeline_mode = #tpu.pipeline_mode<synchronous>, transform_indices = @transform_3, window_bounds = array<i64: 3, 128>}, {pipeline_mode = #tpu.pipeline_mode<synchronous>, transform_indices = @transform_4, window_bounds = array<i64: 1, 128>}, {pipeline_mode = #tpu.pipeline_mode<synchronous>, transform_indices = @transform_5, window_bounds = array<i64: 1, 128>}, {pipeline_mode = #tpu.pipeline_mode<synchronous>, transform_indices = @transform_6, window_bounds = array<i64: 8, 128>}, {pipeline_mode = #tpu.pipeline_mode<synchronous>, transform_indices = @transform_7, window_bounds = array<i64: 128, 128>}, {pipeline_mode = #tpu.pipeline_mode<synchronous>, transform_indices = @transform_8, window_bounds = array<i64: 1, 128>}, {pipeline_mode = #tpu.pipeline_mode<synchronous>, transform_indices = @transform_9, window_bounds = array<i64: 128, 128>}, {pipeline_mode = #tpu.pipeline_mode<synchronous>, transform_indices = @transform_10, window_bounds = array<i64: 1, 128>}, {pipeline_mode = #tpu.pipeline_mode<synchronous>, transform_indices = @transform_11, window_bounds = array<i64: 128, 128>}, {pipeline_mode = #tpu.pipeline_mode<synchronous>, transform_indices = @transform_12, window_bounds = array<i64: 1, 128>}, {transform_indices = @transform_13, window_bounds = array<i64: 8, 128>}]} {
    %c0 = arith.constant 0 : index
    %c0_0 = arith.constant 0 : index
    %0 = vector.load %arg1[%c0, %c0_0] : memref<8x8xf32, #tpu.memory_space<vmem>>, vector<8x8xf32>
    %c0_1 = arith.constant 0 : index
    %c0_2 = arith.constant 0 : index
    %1 = vector.load %arg2[%c0_1, %c0_2] : memref<8x1xi32, #tpu.memory_space<vmem>>, vector<8x1xi32>
    %c0_3 = arith.constant 0 : index
    %c0_4 = arith.constant 0 : index
    %2 = vector.load %arg3[%c0_3, %c0_4] : memref<8x1xf32, #tpu.memory_space<vmem>>, vector<8x1xf32>
    %cst = arith.constant 0.000000e+00 : f32
    %3 = vector.broadcast %cst : f32 to vector<8x128xf32>
    %c0_5 = arith.constant 0 : index
    %c0_6 = arith.constant 0 : index
    %4 = vector.load %arg4[%c0_5, %c0_6] : memref<3x128xf32, #tpu.memory_space<vmem>>, vector<1x128xf32>
    %c0_i32 = arith.constant 0 : i32
    %5 = vector.broadcast %c0_i32 : i32 to vector<8x1xi32>
    %6 = arith.cmpi eq, %1, %5 : vector<8x1xi32>
    %7 = arith.extui %6 : vector<8x1xi1> to vector<8x1xi32>
    %8 = arith.sitofp %7 : vector<8x1xi32> to vector<8x1xf32>
    %9 = vector.broadcast %8 : vector<8x1xf32> to vector<8x128xf32>
    %10 = vector.broadcast %4 : vector<1x128xf32> to vector<8x128xf32>
    %11 = arith.mulf %9, %10 : vector<8x128xf32>
    %12 = arith.addf %3, %11 : vector<8x128xf32>
    %c1 = arith.constant 1 : index
    %c0_7 = arith.constant 0 : index
    %13 = vector.load %arg4[%c1, %c0_7] : memref<3x128xf32, #tpu.memory_space<vmem>>, vector<1x128xf32>
    %c1_i32 = arith.constant 1 : i32
    %14 = vector.broadcast %c1_i32 : i32 to vector<8x1xi32>
    %15 = arith.cmpi eq, %1, %14 : vector<8x1xi32>
    %16 = arith.extui %15 : vector<8x1xi1> to vector<8x1xi32>
    %17 = arith.sitofp %16 : vector<8x1xi32> to vector<8x1xf32>
    %18 = vector.broadcast %17 : vector<8x1xf32> to vector<8x128xf32>
    %19 = vector.broadcast %13 : vector<1x128xf32> to vector<8x128xf32>
    %20 = arith.mulf %18, %19 : vector<8x128xf32>
    %21 = arith.addf %12, %20 : vector<8x128xf32>
    %c2 = arith.constant 2 : index
    %c0_8 = arith.constant 0 : index
    %22 = vector.load %arg4[%c2, %c0_8] : memref<3x128xf32, #tpu.memory_space<vmem>>, vector<1x128xf32>
    %c2_i32 = arith.constant 2 : i32
    %23 = vector.broadcast %c2_i32 : i32 to vector<8x1xi32>
    %24 = arith.cmpi eq, %1, %23 : vector<8x1xi32>
    %25 = arith.extui %24 : vector<8x1xi1> to vector<8x1xi32>
    %26 = arith.sitofp %25 : vector<8x1xi32> to vector<8x1xf32>
    %27 = vector.broadcast %26 : vector<8x1xf32> to vector<8x128xf32>
    %28 = vector.broadcast %22 : vector<1x128xf32> to vector<8x128xf32>
    %29 = arith.mulf %27, %28 : vector<8x128xf32>
    %30 = arith.addf %21, %29 : vector<8x128xf32>
    %c0_9 = arith.constant 0 : index
    %c0_10 = arith.constant 0 : index
    %31 = vector.load %arg5[%c0_9, %c0_10] : memref<1x128xf32, #tpu.memory_space<vmem>>, vector<1x128xf32>
    %32 = vector.broadcast %2 : vector<8x1xf32> to vector<8x128xf32>
    %33 = vector.broadcast %31 : vector<1x128xf32> to vector<8x128xf32>
    %34 = arith.mulf %32, %33 : vector<8x128xf32>
    %c0_11 = arith.constant 0 : index
    %c0_12 = arith.constant 0 : index
    %35 = vector.load %arg6[%c0_11, %c0_12] : memref<1x128xf32, #tpu.memory_space<vmem>>, vector<1x128xf32>
    %36 = vector.broadcast %35 : vector<1x128xf32> to vector<8x128xf32>
    %37 = arith.addf %34, %36 : vector<8x128xf32>
    %cst_13 = arith.constant 0.000000e+00 : f32
    %38 = vector.broadcast %cst_13 : f32 to vector<8x128xf32>
    %39 = arith.subf %38, %37 : vector<8x128xf32>
    %40 = math.exp %39 : vector<8x128xf32>
    %cst_14 = arith.constant 1.000000e+00 : f32
    %41 = vector.broadcast %cst_14 : f32 to vector<8x128xf32>
    %42 = arith.addf %41, %40 : vector<8x128xf32>
    %43 = tpu.reciprocal %42 {approx = true} : vector<8x128xf32> -> vector<8x128xf32>
    %44 = arith.mulf %37, %43 : vector<8x128xf32>
    %45 = arith.truncf %0 : vector<8x8xf32> to vector<8x8xbf16>
    %c0_15 = arith.constant 0 : index
    %c0_16 = arith.constant 0 : index
    %46 = vector.load %arg7[%c0_15, %c0_16] : memref<8x128xbf16, #tpu.memory_space<vmem>>, vector<8x128xbf16>
    %cst_17 = arith.constant dense<0.000000e+00> : vector<8x128xf32>
    %47 = tpu.matmul %45, %46, %cst_17 {dimension_numbers = #tpu.dot_dimension_numbers<[1], [0], [0], [1], [0, 0, 1, 1], [], []>} : vector<8x8xbf16>, vector<8x128xbf16>, vector<8x128xf32> -> vector<8x128xf32>
    %48 = arith.truncf %44 : vector<8x128xf32> to vector<8x128xbf16>
    %c0_18 = arith.constant 0 : index
    %c0_19 = arith.constant 0 : index
    %49 = vector.load %arg8[%c0_18, %c0_19] : memref<128x128xbf16, #tpu.memory_space<vmem>>, vector<128x128xbf16>
    %cst_20 = arith.constant dense<0.000000e+00> : vector<8x128xf32>
    %50 = tpu.matmul %48, %49, %cst_20 {dimension_numbers = #tpu.dot_dimension_numbers<[1], [0], [0], [1], [0, 0, 1, 1], [], []>} : vector<8x128xbf16>, vector<128x128xbf16>, vector<8x128xf32> -> vector<8x128xf32>
    %51 = arith.addf %47, %50 : vector<8x128xf32>
    %52 = arith.addf %51, %30 : vector<8x128xf32>
    %c0_21 = arith.constant 0 : index
    %c0_22 = arith.constant 0 : index
    %53 = vector.load %arg9[%c0_21, %c0_22] : memref<1x128xf32, #tpu.memory_space<vmem>>, vector<1x128xf32>
    %54 = vector.broadcast %53 : vector<1x128xf32> to vector<8x128xf32>
    %55 = arith.addf %52, %54 : vector<8x128xf32>
    %cst_23 = arith.constant 0.000000e+00 : f32
    %56 = vector.broadcast %cst_23 : f32 to vector<8x128xf32>
    %57 = arith.subf %56, %55 : vector<8x128xf32>
    %58 = math.exp %57 : vector<8x128xf32>
    %cst_24 = arith.constant 1.000000e+00 : f32
    %59 = vector.broadcast %cst_24 : f32 to vector<8x128xf32>
    %60 = arith.addf %59, %58 : vector<8x128xf32>
    %61 = tpu.reciprocal %60 {approx = true} : vector<8x128xf32> -> vector<8x128xf32>
    %62 = arith.mulf %55, %61 : vector<8x128xf32>
    %63 = arith.truncf %62 : vector<8x128xf32> to vector<8x128xbf16>
    %c0_25 = arith.constant 0 : index
    %c0_26 = arith.constant 0 : index
    %64 = vector.load %arg10[%c0_25, %c0_26] : memref<128x128xbf16, #tpu.memory_space<vmem>>, vector<128x128xbf16>
    %cst_27 = arith.constant dense<0.000000e+00> : vector<8x128xf32>
    %65 = tpu.matmul %63, %64, %cst_27 {dimension_numbers = #tpu.dot_dimension_numbers<[1], [0], [0], [1], [0, 0, 1, 1], [], []>} : vector<8x128xbf16>, vector<128x128xbf16>, vector<8x128xf32> -> vector<8x128xf32>
    %c0_28 = arith.constant 0 : index
    %c0_29 = arith.constant 0 : index
    %66 = vector.load %arg11[%c0_28, %c0_29] : memref<1x128xf32, #tpu.memory_space<vmem>>, vector<1x128xf32>
    %67 = vector.broadcast %66 : vector<1x128xf32> to vector<8x128xf32>
    %68 = arith.addf %65, %67 : vector<8x128xf32>
    %cst_30 = arith.constant 0.000000e+00 : f32
    %69 = vector.broadcast %cst_30 : f32 to vector<8x128xf32>
    %70 = arith.subf %69, %68 : vector<8x128xf32>
    %71 = math.exp %70 : vector<8x128xf32>
    %cst_31 = arith.constant 1.000000e+00 : f32
    %72 = vector.broadcast %cst_31 : f32 to vector<8x128xf32>
    %73 = arith.addf %72, %71 : vector<8x128xf32>
    %74 = tpu.reciprocal %73 {approx = true} : vector<8x128xf32> -> vector<8x128xf32>
    %75 = arith.mulf %68, %74 : vector<8x128xf32>
    %76 = arith.truncf %75 : vector<8x128xf32> to vector<8x128xbf16>
    %c0_32 = arith.constant 0 : index
    %c0_33 = arith.constant 0 : index
    %77 = vector.load %arg12[%c0_32, %c0_33] : memref<128x128xbf16, #tpu.memory_space<vmem>>, vector<128x128xbf16>
    %cst_34 = arith.constant dense<0.000000e+00> : vector<8x128xf32>
    %78 = tpu.matmul %76, %77, %cst_34 {dimension_numbers = #tpu.dot_dimension_numbers<[1], [0], [0], [1], [0, 0, 1, 1], [], []>} : vector<8x128xbf16>, vector<128x128xbf16>, vector<8x128xf32> -> vector<8x128xf32>
    %c0_35 = arith.constant 0 : index
    %c0_36 = arith.constant 0 : index
    %79 = vector.load %arg13[%c0_35, %c0_36] : memref<1x128xf32, #tpu.memory_space<vmem>>, vector<1x128xf32>
    %80 = vector.broadcast %79 : vector<1x128xf32> to vector<8x128xf32>
    %81 = arith.addf %78, %80 : vector<8x128xf32>
    %c0_37 = arith.constant 0 : index
    %c0_38 = arith.constant 0 : index
    %82 = vector.load %arg14[%c0_37, %c0_38] : memref<8x128xf32, #tpu.memory_space<vmem>>, vector<8x128xf32>
    tpu.vector_store %arg14[%c0_37, %c0_38], %81 {strides = array<i32>} : memref<8x128xf32, #tpu.memory_space<vmem>>, vector<8x128xf32>,
    return
  }
  func.func @transform_0(%arg0: i32) -> (i32, i32) {
    %c0_i32 = arith.constant 0 : i32
    %c0_i32_0 = arith.constant 0 : i32
    return %arg0, %c0_i32 : i32, i32
  }
  func.func @transform_1(%arg0: i32) -> (i32, i32) {
    %c0_i32 = arith.constant 0 : i32
    %c0_i32_0 = arith.constant 0 : i32
    return %arg0, %c0_i32 : i32, i32
  }
  func.func @transform_2(%arg0: i32) -> (i32, i32) {
    %c0_i32 = arith.constant 0 : i32
    %c0_i32_0 = arith.constant 0 : i32
    return %arg0, %c0_i32 : i32, i32
  }
  func.func @transform_3(%arg0: i32) -> (i32, i32) {
    %c0_i32 = arith.constant 0 : i32
    %c0_i32_0 = arith.constant 0 : i32
    %c0_i32_1 = arith.constant 0 : i32
    return %c0_i32, %c0_i32_0 : i32, i32
  }
  func.func @transform_4(%arg0: i32) -> (i32, i32) {
    %c0_i32 = arith.constant 0 : i32
    %c0_i32_0 = arith.constant 0 : i32
    %c0_i32_1 = arith.constant 0 : i32
    return %c0_i32, %c0_i32_0 : i32, i32
  }
  func.func @transform_5(%arg0: i32) -> (i32, i32) {
    %c0_i32 = arith.constant 0 : i32
    %c0_i32_0 = arith.constant 0 : i32
    %c0_i32_1 = arith.constant 0 : i32
    return %c0_i32, %c0_i32_0 : i32, i32
  }
  func.func @transform_6(%arg0: i32) -> (i32, i32) {
    %c0_i32 = arith.constant 0 : i32
    %c0_i32_0 = arith.constant 0 : i32
    %c0_i32_1 = arith.constant 0 : i32
    return %c0_i32, %c0_i32_0 : i32, i32
  }
  func.func @transform_7(%arg0: i32) -> (i32, i32) {
    %c0_i32 = arith.constant 0 : i32
    %c0_i32_0 = arith.constant 0 : i32
    %c0_i32_1 = arith.constant 0 : i32
    return %c0_i32, %c0_i32_0 : i32, i32
  }
  func.func @transform_8(%arg0: i32) -> (i32, i32) {
    %c0_i32 = arith.constant 0 : i32
    %c0_i32_0 = arith.constant 0 : i32
    %c0_i32_1 = arith.constant 0 : i32
    return %c0_i32, %c0_i32_0 : i32, i32
  }
  func.func @transform_9(%arg0: i32) -> (i32, i32) {
    %c0_i32 = arith.constant 0 : i32
    %c0_i32_0 = arith.constant 0 : i32
    %c0_i32_1 = arith.constant 0 : i32
    return %c0_i32, %c0_i32_0 : i32, i32
  }
  func.func @transform_10(%arg0: i32) -> (i32, i32) {
    %c0_i32 = arith.constant 0 : i32
    %c0_i32_0 = arith.constant 0 : i32
    %c0_i32_1 = arith.constant 0 : i32
    return %c0_i32, %c0_i32_0 : i32, i32
  }
  func.func @transform_11(%arg0: i32) -> (i32, i32) {
    %c0_i32 = arith.constant 0 : i32
    %c0_i32_0 = arith.constant 0 : i32
    %c0_i32_1 = arith.constant 0 : i32
    return %c0_i32, %c0_i32_0 : i32, i32
  }
  func.func @transform_12(%arg0: i32) -> (i32, i32) {
    %c0_i32 = arith.constant 0 : i32
    %c0_i32_0 = arith.constant 0 : i32
    %c0_i32_1 = arith.constant 0 : i32
    return %c0_i32, %c0_i32_0 : i32, i32
  }
  func.func @transform_13(%arg0: i32) -> (i32, i32) {
    %c0_i32 = arith.constant 0 : i32
    %c0_i32_0 = arith.constant 0 : i32
    return %arg0, %c0_i32 : i32, i32
  }
}

</mosaic_0001>

<bundles_post_ra>
// kernel: tpu_custom_call.1
= control target key start
LH: loop header
LB: loop body
LE: loop exit
PB: predicated region body
PF: predicated region fallthrough
CT: control target
= control target key end

     0   :  { %18 = vsyncpa [#allocation3], 0  ;;  %s1071_s0 = inlined_call_operand.vmem [shape: f32[8,8], index: 0, kind: input, shape index: {}]   ;;  %s1072_s1 = inlined_call_operand.vmem [shape: s32[8,1], index: 1, kind: input, shape index: {}]   ;;  %s1073_s2 = inlined_call_operand.vmem [shape: f32[8,1], index: 2, kind: input, shape index: {}]   ;;  %s1074_s3 = inlined_call_operand.vmem [shape: f32[3,128], index: 3, kind: input, shape index: {}]   ;;  %s1075_s4 = inlined_call_operand.vmem [shape: f32[1,128], index: 4, kind: input, shape index: {}]   ;;  %s1076_s5 = inlined_call_operand.vmem [shape: f32[1,128], index: 5, kind: input, shape index: {}]   ;;  %s1077_s6 = inlined_call_operand.vmem [shape: bf16[8,128], index: 6, kind: input, shape index: {}]   ;;  %s1078_s7 = inlined_call_operand.hbm [shape: bf16[128,128], index: 7, kind: input, shape index: {}]   ;;  %s1079_s8 = inlined_call_operand.vmem [shape: f32[1,128], index: 8, kind: input, shape index: {}]   ;;  %s1080_s9 = inlined_call_operand.hbm [shape: bf16[128,128], index: 9, kind: input, shape index: {}]   ;;  %s1081_s10 = inlined_call_operand.vmem [shape: f32[1,128], index: 10, kind: input, shape index: {}]   ;;  %s1082_s11 = inlined_call_operand.hbm [shape: bf16[128,128], index: 11, kind: input, shape index: {}]   ;;  %s1083_s12 = inlined_call_operand.vmem [shape: f32[1,128], index: 12, kind: input, shape index: {}]   ;;  %s1084_s13 = inlined_call_operand.hbm [shape: f32[8,128], index: 13, kind: output, shape index: {}]  }
   0x1   :  { %19 = vsyncpa [#allocation6], 0 }
   0x2   :  { %20 = vsyncpa [#allocation4], 0  ;;  %s856_s25 = smov [#allocation5]   ;;  %s857_s27 = smov [#allocation2]  }
   0x3   :  { %s54_s26 = sshll.u32 %s856_s25, 4  ;;  %s40_s28 = sshll.u32 %s857_s27, 4  ;;  %s55_s26 = int_to_ptr.vmem [resolvable:$true] %s54_s26  ;;  %s935_s28 = int_to_ptr.vmem [resolvable:$true] %s40_s28 }
   0x4   :  { %s762_s14 = scalar_lea.hbm %s1080_s9, 1024 }
   0x5   :  { %p763_p0 = scmp.ne.s32.totalorder %s1080_s9, %s762_s14  ;;  %p766_p1 = scmp.lt.u32.totalorder %s762_s14, %s1080_s9 }
   0x7   :  { %p768_p2 = pnand %p766_p1, %p763_p0 }
   0x9   :  { %771 = shalt.err (!%p768_p2)
}
   0xa   :  { %s772_s19 = scalar_lea.vmem %s55_s26, 1024  ;;  %p777_p4 = scmp.lt.s32.totalorder %s55_s26, %s55_s26 }
   0xb   :  { %p773_p3 = scmp.ne.s32.totalorder %s55_s26, %s772_s19  ;;  %p778_p5 = scmp.lt.s32.totalorder %s772_s19, %s772_s19 }
   0xd   :  { %p779_p6 = por %p778_p5, %p777_p4 }
   0xf   :  { %p780_p7 = pnand %p779_p6, %p773_p3 }
  0x11   :  { %783 = shalt.err (!%p780_p7)
}
  0x12   :  { %s858_s20 = smov 64   ;;  %s859_s21 = smov 4  }
  0x13   :  { %60 = dma.hbm_to_vmem [thread:$0]  %s1080_s9, 1024, %s55_s26, [#allocation6], %s858_s20, %s858_s20, %s859_s21  }
  0x14   :  { %s784_s27 = scalar_lea.hbm %s1078_s7, 1024 }
  0x15   :  { %p785_p8 = scmp.ne.s32.totalorder %s1078_s7, %s784_s27  ;;  %p788_p9 = scmp.lt.u32.totalorder %s784_s27, %s1078_s7 }
  0x17   :  { %p790_p10 = pnand %p788_p9, %p785_p8 }
  0x19   :  { %793 = shalt.err (!%p790_p10)
}
  0x1a   :  { %s794_s16 = scalar_lea.vmem %s935_s28, 1024  ;;  %p799_p12 = scmp.lt.s32.totalorder %s935_s28, %s935_s28 }
  0x1b   :  { %p795_p11 = scmp.ne.s32.totalorder %s935_s28, %s794_s16  ;;  %p800_p13 = scmp.lt.s32.totalorder %s794_s16, %s794_s16 }
  0x1d   :  { %p801_p0 = por %p800_p13, %p799_p12 }
  0x1f   :  { %p802_p1 = pnand %p801_p0, %p795_p11 }
  0x21   :  { %805 = shalt.err (!%p802_p1)
}
  0x22   :  { %46 = dma.hbm_to_vmem [thread:$0]  %s1078_s7, 1024, %s935_s28, [#allocation3], %s858_s20, %s858_s20, %s859_s21  }
  0x23   :  { %s860_s17 = smov [#allocation7]   ;;  %s806_s23 = scalar_lea.hbm %s1082_s11, 1024 }
  0x24   :  { %s68_s18 = sshll.u32 %s860_s17, 4  ;;  %p807_p2 = scmp.ne.s32.totalorder %s1082_s11, %s806_s23  ;;  %s69_s18 = int_to_ptr.vmem [resolvable:$true] %s68_s18 }
  0x25   :  { %p810_p3 = scmp.lt.u32.totalorder %s806_s23, %s1082_s11 }
  0x27   :  { %p812_p4 = pnand %p810_p3, %p807_p2 }
  0x29   :  { %815 = shalt.err (!%p812_p4)
}
  0x2a   :  { %s816_s30 = scalar_lea.vmem %s69_s18, 1024  ;;  %p821_p6 = scmp.lt.s32.totalorder %s69_s18, %s69_s18 }
  0x2b   :  { %p817_p5 = scmp.ne.s32.totalorder %s69_s18, %s816_s30  ;;  %p822_p7 = scmp.lt.s32.totalorder %s816_s30, %s816_s30 }
  0x2d   :  { %p823_p8 = por %p822_p7, %p821_p6 }
  0x2f   :  { %p824_p9 = pnand %p823_p8, %p817_p5 }
  0x31   :  { %827 = shalt.err (!%p824_p9)
}
  0x32   :  { %74 = dma.hbm_to_vmem [thread:$0]  %s1082_s11, 1024, %s69_s18, [#allocation6], %s858_s20, %s858_s20, %s859_s21  }
  0x33   :  { %850 = dma.done.wait [#allocation3], 1024  }
  0x34   :  { %851 = vsyncadd [#allocation3], 4294966272 }
  0x35   :  { %852 = dma.done.wait [#allocation6], 2048  }
  0x36   :  { %853 = vsyncadd [#allocation6], 4294965248  ;;  %v861_v0 = vmov 0   ;;  %v862_v1 = vmov 0.0   ;;  %v89_v2 = vld [vmem:[%s1073_s2] sm:$0xff]  ;;  %v727_v9 = vld [vmem:[#allocation2 + $0x8] sm:$0xff]  }
  0x37   :  { %719 = vset.pattern.permute.xlu0 %v861_v0  ;;  %725 = vset.pattern.permute.xlu1 %v861_v0  ;;  %v88_v3 = vld [vmem:[%s1072_s1] sm:$0xff]  ;;  %v728_v10 = vld [vmem:[#allocation2 + $0x10] sm:$0xff]   ;;  %v729_v11 = vld [vmem:[#allocation2 + $0x18] sm:$0xff]   ;;  %vm273_vm3 = vcmask 1043456   ;;  %vm863_vm4 = vmmov 0   ;;  %vm269_vm5 = vcmask 64512  }
  0x38   :  { %644 = vmatprep.subr.bf16.mxu0 %v862_v1  ;;  %664 = vmatprep.subr.bf16.mxu1 %v862_v1  ;;  %vm91_vm0 = vcmp.eq.s32.totalorder %v88_v3, 0  ;;  %vm106_vm1 = vcmp.eq.s32.totalorder %v88_v3, 1  ;;  %vm121_vm2 = vcmp.eq.s32.totalorder %v88_v3, 2  ;;  %v726_v8 = vld [vmem:[#allocation2] sm:$0xff]   ;;  %v731_v13 = vld [vmem:[#allocation2 + $0x28] sm:$0xff]   ;;  %v732_v18 = vld [vmem:[#allocation2 + $0x30] sm:$0xff]  }
  0x39   :  { %138 = vperm.xlu0 %719, %v89_v2   ;;  %v579_v4 = vsel %vm91_vm0, 1.0, %v862_v1  ;;  %v581_v5 = vsel %vm106_vm1, 1.0, %v862_v1  ;;  %v583_v6 = vsel %vm121_vm2, 1.0, %v862_v1  ;;  %645 = vmatpush3.bf16.msra.mxu0 %v726_v8  ;;  %v730_v12 = vld [vmem:[#allocation2 + $0x20] sm:$0xff]   ;;  %v733_v19 = vld [vmem:[#allocation2 + $0x38] sm:$0xff]   ;;  %v735_v37 = vld [vmem:[#allocation5 + $0x8] sm:$0xff]  }
  0x3a   :  { %v720_v7 = vpack.i.bf16 %v581_v5, %v579_v4  ;;  %126 = vperm.xlu1 %725, %v583_v6   ;;  %646 = vmatprep.subr.bf16.mxu0 %v862_v1  ;;  %v163_v14 = vld [vmem:[%s1077_s6] sm:$0xf]  ;;  %v736_v38 = vld [vmem:[#allocation5 + $0x10] sm:$0xff]   ;;  %v737_v39 = vld [vmem:[#allocation5 + $0x18] sm:$0xff]  }
  0x3b   :  { %v275_v15 = vsel %vm273_vm3, %v163_v14, 0  ;;  %666 = vmatprep.mubr.msk.bf16.mxu1 %vm863_vm4, %v862_v1  ;;  %v87_v16 = vld [vmem:[%s1071_s0] sm:$0xff]  ;;  %660 = vmatprep.mubr.msk.bf16.mxu0 %vm863_vm4, %v862_v1  ;;  %v739_v41 = vld [vmem:[#allocation5 + $0x28] sm:$0xff]   ;;  %v740_v42 = vld [vmem:[#allocation5 + $0x30] sm:$0xff]  }
  0x3c   :  { %665 = vmatpush3.bf16.msra.mxu1 %v275_v15  ;;  %v162_v17 = vpack.c.bf16 %v87_v16, %v87_v16  ;;  %v585_v20 = vld [vmem:[%s1075_s4] ss:$0 sm:$0xff]  ;;  %v741_v43 = vld [vmem:[#allocation5 + $0x38] sm:$0xff]   ;;  %v582_v48 = vld [vmem:[%s1074_s3 + $0x1] ss:$0 sm:$0xff] }
  0x3d   :  { %721 = vperm.xlu0 %719, %v720_v7   ;;  %647 = vmatpush3.bf16.msra.mxu0 %v727_v9  ;;  %v586_v21 = vld [vmem:[%s1076_s5] ss:$0 sm:$0xff]  ;;  %v584_v51 = vld [vmem:[%s1074_s3 + $0x2] ss:$0 sm:$0xff]  ;;  %v743_v9 = vld [vmem:[#allocation7 + $0x8] sm:$0xff]  }
  0x3e   :  { %648 = vmatprep.subr.bf16.mxu0 %v862_v1  ;;  %670 = vmatprep.subr.bf16.mxu1 %v862_v1  ;;  %v734_v36 = vld [vmem:[#allocation5] sm:$0xff]   ;;  %v748_v14 = vld [vmem:[#allocation7 + $0x30] sm:$0xff]   ;;  %v749_v15 = vld [vmem:[#allocation7 + $0x38] sm:$0xff]  }
  0x3f   :  { %667 = vmatmul.mubr.msk.bf16.vlgmr.msra.gmra.mrb[0].mxu1 %vm269_vm5, %v162_v17  ;;  %v738_v40 = vld [vmem:[#allocation5 + $0x20] sm:$0xff]  }
  0x40   :  { %686 = vmatprep.mubr.msk.bf16.mxu1 %vm863_vm4, %v862_v1  ;;  %671 = vmatpush3.bf16.msra.mxu1 %v734_v36  ;;  %v580_v47 = vld [vmem:[%s1074_s3] ss:$0 sm:$0xff] }
  0x41   :  { %649 = vmatpush3.bf16.msra.mxu0 %v728_v10  ;;  %672 = vmatprep.subr.bf16.mxu1 %v862_v1  ;;  %v596_v59 = vld [vmem:[%s1079_s8] ss:$0 sm:$0xff]  ;;  %v744_v10 = vld [vmem:[#allocation7 + $0x10] sm:$0xff]  }
  0x42   :  { %650 = vmatprep.subr.bf16.mxu0 %v862_v1  ;;  %v742_v8 = vld [vmem:[#allocation7] sm:$0xff]  }
  0x43   :  { %v597_v16 = vld [vmem:[%s1081_s10] ss:$0 sm:$0xff]  ;;  %s864_s10 = smov [#allocation8]  }
  0x44   :  { %673 = vmatpush3.bf16.msra.mxu1 %v735_v37  ;;  %s569_s29 = sshll.u32 %s864_s10, 4  ;;  %s570_s29 = int_to_ptr.vmem [resolvable:$true] %s569_s29 }
  0x45   :  { %651 = vmatpush3.bf16.msra.mxu0 %v729_v11  ;;  %674 = vmatprep.subr.bf16.mxu1 %v862_v1  ;;  %v745_v11 = vld [vmem:[#allocation7 + $0x18] sm:$0xff]   ;;  %s828_s30 = scalar_lea.vmem %s570_s29, 128  ;;  %p833_p11 = scmp.lt.s32.totalorder %s570_s29, %s570_s29 }
  0x46   :  { %652 = vmatprep.subr.bf16.mxu0 %v862_v1  ;;  %p829_p10 = scmp.ne.s32.totalorder %s570_s29, %s828_s30  ;;  %p834_p12 = scmp.lt.s32.totalorder %s828_s30, %s828_s30 }
  0x48   :  { %675 = vmatpush3.bf16.msra.mxu1 %v736_v38  ;;  %p835_p13 = por %p834_p12, %p833_p11 }
  0x49   :  { %653 = vmatpush3.bf16.msra.mxu0 %v730_v12  ;;  %676 = vmatprep.subr.bf16.mxu1 %v862_v1  ;;  %v746_v12 = vld [vmem:[#allocation7 + $0x20] sm:$0xff]  }
  0x4a   :  { %654 = vmatprep.subr.bf16.mxu0 %v862_v1  ;;  %p836_p0 = pnand %p835_p13, %p829_p10 }
  0x4c   :  { %677 = vmatpush3.bf16.msra.mxu1 %v737_v39 }
  0x4d   :  { %655 = vmatpush3.bf16.msra.mxu0 %v731_v13  ;;  %678 = vmatprep.subr.bf16.mxu1 %v862_v1  ;;  %v747_v13 = vld [vmem:[#allocation7 + $0x28] sm:$0xff]  }
  0x4e   :  { %656 = vmatprep.subr.bf16.mxu0 %v862_v1 }
  0x50   :  { %679 = vmatpush3.bf16.msra.mxu1 %v738_v40 }
  0x51   :  { %657 = vmatpush3.bf16.msra.mxu0 %v732_v18  ;;  %680 = vmatprep.subr.bf16.mxu1 %v862_v1 }
  0x52   :  { %658 = vmatprep.subr.bf16.mxu0 %v862_v1 }
  0x54   :  { %681 = vmatpush3.bf16.msra.mxu1 %v739_v41 }
  0x55   :  { %659 = vmatpush3.bf16.msra.mxu0 %v733_v19  ;;  %682 = vmatprep.subr.bf16.mxu1 %v862_v1 }
  0x56   :  { %690 = vmatprep.subr.bf16.mxu0 %v862_v1 }
  0x58   :  { %683 = vmatpush3.bf16.msra.mxu1 %v740_v42 }
  0x59   :  { %684 = vmatprep.subr.bf16.mxu1 %v862_v1 }
  0x5c   :  { %685 = vmatpush3.bf16.msra.mxu1 %v741_v43 }
  0xb8   :  { %v139_v22 = vpop.permute.xlu0 %138 }
  0xb9   :  { %v147_v23 = vmul.f32 %v585_v20, %v139_v22  ;;  %v127_v52 = vpop.permute.xlu1 %126 }
  0xba   :  { %v133_v54 = vmul.f32 %v584_v51, %v127_v52 }
  0xbb   :  { %v155_v24 = vadd.f32 %v586_v21, %v147_v23 }
  0xbc   :  { %v722_v44 = vpop.permute.xlu0 %721 }
  0xbd   :  { %v156_v25 = vsub.f32 0.0, %v155_v24  ;;  %v724_v45 = vunpack.i.h.bf16 %v722_v44  ;;  %v723_v46 = vunpack.i.l.bf16 %v722_v44 }
  0xbf   :  { %v157_v26 = vmul.f32 1.442695, %v156_v25  ;;  %v118_v49 = vmul.f32 %v724_v45, %v582_v48  ;;  %v103_v50 = vmul.f32 %v723_v46, %v580_v47 }
  0xc1   :  { %750 = vpow2.f32 %v157_v26  ;;  %v119_v53 = vadd.f32 %v118_v49, %v103_v50 }
  0xc3   :  { %v134_v56 = vadd.f32 %v133_v54, %v119_v53 }
  0xcb   :  { %v751_v27 = vpop.eup %750 }
  0xcc   :  { %v159_v28 = vadd.f32 1.0, %v751_v27 }
  0xce   :  { %752 = vrcp.f32 %v159_v28  ;;  %v606_v28 = vld [vmem:[%s1083_s12] ss:$0 sm:$0xff] }
  0xd8   :  { %v753_v29 = vpop.eup %752 }
  0xd9   :  { %v161_v30 = vmul.f32 %v753_v29, %v155_v24 }
  0xdb   :  { %v164_v31 = vpack.c.bf16 %v161_v30, %v161_v30 }
  0xdd   :  { %661 = vmatmul.mubr.bf16.vlgmr.msra.gmra.mrb[0].mxu0 %v164_v31 }
  0xde   :  { %706 = vmatprep.mubr.msk.bf16.mxu0 %vm863_vm4, %v862_v1  ;;  %691 = vmatpush3.bf16.msra.mxu0 %v742_v8 }
  0xdf   :  { %692 = vmatprep.subr.bf16.mxu0 %v862_v1 }
  0xe2   :  { %693 = vmatpush3.bf16.msra.mxu0 %v743_v9 }
  0xe3   :  { %694 = vmatprep.subr.bf16.mxu0 %v862_v1 }
  0xe6   :  { %695 = vmatpush3.bf16.msra.mxu0 %v744_v10 }
  0xe7   :  { %696 = vmatprep.subr.bf16.mxu0 %v862_v1 }
  0xea   :  { %697 = vmatpush3.bf16.msra.mxu0 %v745_v11 }
  0xeb   :  { %698 = vmatprep.subr.bf16.mxu0 %v862_v1 }
  0xee   :  { %699 = vmatpush3.bf16.msra.mxu0 %v746_v12 }
  0xef   :  { %700 = vmatprep.subr.bf16.mxu0 %v862_v1 }
  0xf2   :  { %701 = vmatpush3.bf16.msra.mxu0 %v747_v13 }
  0xf3   :  { %702 = vmatprep.subr.bf16.mxu0 %v862_v1 }
  0xf6   :  { %703 = vmatpush3.bf16.msra.mxu0 %v748_v14 }
  0xf7   :  { %704 = vmatprep.subr.bf16.mxu0 %v862_v1 }
  0xfa   :  { %705 = vmatpush3.bf16.msra.mxu0 %v749_v15 }
 0x112   :  { %v311_v32 = vpop.f32.mrb[0].mxu1 }
 0x113   :  { %v668_v33 = vpop.f32.mrb[1].mxu1 }
 0x114   :  { %v314_v34 = vpop.f32.mrb[2].mxu1 }
 0x115   :  { %v669_v35 = vpop.f32.mrb[3].mxu1 }
 0x1b0   :  { %v263_v55 = vpop.f32.mrb[0].mxu0 }
 0x1b1   :  { %v312_v57 = vadd.f32 %v311_v32, %v263_v55  ;;  %v662_v58 = vpop.f32.mrb[1].mxu0 }
 0x1b2   :  { %v266_v60 = vpop.f32.mrb[2].mxu0 }
 0x1b3   :  { %v317_v61 = vadd.f32 %v312_v57, %v134_v56  ;;  %v663_v62 = vpop.f32.mrb[3].mxu0 }
 0x1b5   :  { %v325_v63 = vadd.f32 %v596_v59, %v317_v61 }
 0x1b7   :  { %v326_v0 = vsub.f32 0.0, %v325_v63 }
 0x1b9   :  { %v327_v2 = vmul.f32 1.442695, %v326_v0 }
 0x1bb   :  { %754 = vpow2.f32 %v327_v2 }
 0x1c5   :  { %v755_v3 = vpop.eup %754 }
 0x1c6   :  { %v329_v4 = vadd.f32 1.0, %v755_v3 }
 0x1c8   :  { %756 = vrcp.f32 %v329_v4 }
 0x1d2   :  { %v757_v5 = vpop.eup %756 }
 0x1d3   :  { %v331_v6 = vmul.f32 %v757_v5, %v325_v63 }
 0x1d5   :  { %v332_v7 = vpack.c.bf16 %v331_v6, %v331_v6 }
 0x1d7   :  { %687 = vmatmul.mubr.bf16.vlgmr.msra.gmra.mrb[4].mxu1 %v332_v7 }
 0x2aa   :  { %v438_v17 = vpop.f32.mrb[4].mxu1 }
 0x2ab   :  { %v439_v18 = vadd.f32 %v597_v16, %v438_v17  ;;  %v688_v19 = vpop.f32.mrb[5].mxu1 }
 0x2ac   :  { %v441_v20 = vpop.f32.mrb[6].mxu1 }
 0x2ad   :  { %v444_v21 = vsub.f32 0.0, %v439_v18  ;;  %v689_v22 = vpop.f32.mrb[7].mxu1 }
 0x2af   :  { %v445_v23 = vmul.f32 1.442695, %v444_v21 }
 0x2b1   :  { %758 = vpow2.f32 %v445_v23 }
 0x2bb   :  { %v759_v24 = vpop.eup %758 }
 0x2bc   :  { %v447_v25 = vadd.f32 1.0, %v759_v24 }
 0x2be   :  { %760 = vrcp.f32 %v447_v25 }
 0x2c8   :  { %v761_v26 = vpop.eup %760 }
 0x2c9   :  { %v449_v27 = vmul.f32 %v761_v26, %v439_v18 }
 0x2cb   :  { %v450_v1 = vpack.c.bf16 %v449_v27, %v449_v27 }
 0x2cd   :  { %707 = vmatmul.mubr.bf16.vlgmr.msra.gmra.mrb[4].mxu0 %v450_v1 }
 0x3a0   :  { %v556_v29 = vpop.f32.mrb[4].mxu0 }
 0x3a1   :  { %v557_v30 = vadd.f32 %v606_v28, %v556_v29  ;;  %v708_v31 = vpop.f32.mrb[5].mxu0 }
 0x3a2   :  { %v559_v32 = vpop.f32.mrb[6].mxu0 }
 0x3a3   :  { %562 = vst [vmem:[#allocation8] sm:$0xff] %v557_v30  ;;  %v709_v33 = vpop.f32.mrb[7].mxu0 }
 0x3a4   :  { %839 = shalt.err (!%p836_p0)
}
 0x3a5   :  { %s840_s12 = scalar_lea.hbm %s1084_s13, 128 }
 0x3a6   :  { %p841_p1 = scmp.ne.s32.totalorder %s1084_s13, %s840_s12  ;;  %p844_p2 = scmp.lt.u32.totalorder %s840_s12, %s1084_s13 }
 0x3a8   :  { %p846_p3 = pnand %p844_p2, %p841_p1 }
 0x3aa   :  { %849 = shalt.err (!%p846_p3)
}
 0x3ab   :  { %572 = dma.vmem_to_hbm [thread:$0]  %s570_s29, 128, %s1084_s13, [#allocation4]  }
 0x3ac   :  { %854 = dma.done.wait [#allocation4], 128  }
 0x3ad   :  { %855 = vsyncadd [#allocation4], 4294967168 }
 0x3ae   :  { %576 = vsyncpa [#allocation3], 1 }
 0x3af   :  { %577 = vsyncpa [#allocation6], 1 }
 0x3b0   :  { %578 = vsyncpa [#allocation4], 1 }

</bundles_post_ra>
